<compile_context>
chip_gen: v7x
topology: tpu7x:2x2x1
jax: 0.10.0
libtpu: 0.0.40
codegen_flags: <defaults>
</compile_context>

<pallas_src>
import numpy as np
import jax
import jax.numpy as jnp
from jax import lax
from jax.experimental import pallas as pl
from jax.experimental.pallas import tpu as pltpu


def _round_up(x, m):
    return (x + m - 1) // m * m


# ----------------------------------------------------------------------------
# kernels: out[i,j] = b[j] + sum_k x[i,k] * w[j,k]   (W kept in (N, K) layout)
# ----------------------------------------------------------------------------
def _linear_kernel_f32(x_ref, w_ref, b_ref, o_ref):
    """f32 output: accumulate directly into the resident output block."""
    k = pl.program_id(2)

    @pl.when(k == 0)
    def _init():
        # fold the bias into the accumulator init (no epilogue add needed)
        o_ref[...] = jnp.broadcast_to(b_ref[...], o_ref.shape).astype(o_ref.dtype)

    o_ref[...] += lax.dot_general(
        x_ref[...], w_ref[...],
        dimension_numbers=(((1,), (1,)), ((), ())),   # x @ W.T on the MXU
        preferred_element_type=jnp.float32)


def _linear_kernel_acc(x_ref, w_ref, b_ref, o_ref, acc_ref):
    """non-f32 output: f32 VMEM accumulator + cast in the epilogue."""
    k = pl.program_id(2)

    @pl.when(k == 0)
    def _init():
        acc_ref[...] = jnp.broadcast_to(
            b_ref[...].astype(jnp.float32), acc_ref.shape)

    acc_ref[...] += lax.dot_general(
        x_ref[...], w_ref[...],
        dimension_numbers=(((1,), (1,)), ((), ())),
        preferred_element_type=jnp.float32)

    @pl.when(k == pl.num_programs(2) - 1)
    def _finalize():
        o_ref[...] = acc_ref[...].astype(o_ref.dtype)


# ----------------------------------------------------------------------------
# VMEM budgeting / tile selection
# ----------------------------------------------------------------------------
def _vmem_budget():
    try:
        cap = pltpu.get_tpu_info().vmem_capacity_bytes
    except Exception:
        cap = 64 << 20          # conservative fallback: v7x per-TC physical VMEM
    vmem_limit = min(cap * 3 // 4, 48 << 20)   # never request more than ~48 MiB
    tile_budget = vmem_limit - (4 << 20)       # headroom for compiler scratch
    return int(vmem_limit), int(tile_budget)


def _footprint(tm, tn, tk, itemsize, out_f32, w_buffers=2):
    b = 2 * (tm * tk + tn) * itemsize            # double-buffered x + bias
    b += w_buffers * tk * tn * itemsize          # weight buffers
    b += 2 * tm * tn * (4 if out_f32 else itemsize)   # output buffers
    if not out_f32:
        b += tm * tn * 4                         # f32 accumulator scratch
    return b


def _pick_tiles(M, K, N, itemsize, out_f32, budget):
    # big, 256-multiple M/N tiles keep the 2x256^2 MXU fed on v6e/v7x and sit
    # near the measured ~85% HBM-roofline point; shrink only if over budget.
    tm = min(512, _round_up(M, 8))
    tn = min(512, _round_up(N, 128))
    tk = min(1024, _round_up(K, 128))

    def shrink(t, align):
        return max(align, _round_up(t // 2, align))

    while _footprint(tm, tn, tk, itemsize, out_f32) > budget:
        if tk > 128 and tk >= max(tm, tn):
            tk = shrink(tk, 128)
        elif tn > 128 and tn >= tm:
            tn = shrink(tn, 128)
        elif tm > 8:
            tm = shrink(tm, 8)
        else:
            break
    return tm, tn, tk


# ----------------------------------------------------------------------------
# wrapper: PyTorch nn.Linear semantics
#   x:      (..., in_reprs)
#   weight: (out_reprs, in_reprs)   (PyTorch layout, consumed as-is)
#   bias:   (out_reprs,)
# returns   (..., out_reprs)
# ----------------------------------------------------------------------------
def linear_forward(x, weight, bias):
    orig_lead = x.shape[:-1]
    out_reprs, in_reprs = weight.shape

    x2 = x.reshape(-1, in_reprs)
    M, K = x2.shape
    N = out_reprs

    out_dtype = x.dtype
    out_f32 = out_dtype == jnp.float32
    itemsize = jnp.dtype(x.dtype).itemsize

    vmem_limit, budget = _vmem_budget()
    tm, tn, tk = _pick_tiles(M, K, N, itemsize, out_f32, budget)

    Mp = _round_up(M, tm)
    Kp = _round_up(K, tk)
    Np = _round_up(N, tn)

    # v7x megacore: make sure the "parallel" part of the grid has >= 2 steps
    # when the problem allows it, so both TensorCores get work.
    if Mp // tm == 1 and Np // tn == 1:
        if tn >= 256 and (tn // 2) % 128 == 0:
            tn //= 2
        elif tm >= 16 and (tm // 2) % 8 == 0:
            tm //= 2

    grid = (Mp // tm, Np // tn, Kp // tk)
    grid_k = Kp // tk

    # Pad only when actually needed: for typical (8,128)-aligned model dims
    # these are no-ops and skip a full HBM read+write per operand.
    xp = x2 if (Mp == M and Kp == K) else (
        jnp.zeros((Mp, Kp), x2.dtype).at[:M, :K].set(x2))
    wp = weight if (Np == N and Kp == K) else (
        jnp.zeros((Np, Kp), weight.dtype).at[:N, :K].set(weight))
    b2 = bias.reshape(1, N)
    bp = b2 if (Np == N) else jnp.zeros((1, Np), bias.dtype).at[:, :N].set(b2)

    # Deepen the weight pipeline for small-M (DMA-bound) shapes, if it fits.
    use_buffered_w = (
        Mp // tm <= 2 and grid_k >= 3 and
        _footprint(tm, tn, tk, itemsize, out_f32, w_buffers=3) <= budget)
    if use_buffered_w:
        w_spec = pl.BlockSpec((tn, tk), lambda i, j, k: (j, k),
                              pipeline_mode=pl.Buffered(3))
    else:
        w_spec = pl.BlockSpec((tn, tk), lambda i, j, k: (j, k))

    if out_f32:
        kernel = _linear_kernel_f32
        scratch = []
    else:
        kernel = _linear_kernel_acc
        scratch = [pltpu.VMEM((tm, tn), jnp.float32)]

    cost = pl.CostEstimate(
        flops=2 * M * K * N,
        bytes_accessed=itemsize * (M * K + N * K + N)
        + jnp.dtype(out_dtype).itemsize * M * N,
        transcendentals=0)

    out_padded = pl.pallas_call(
        kernel,
        out_shape=jax.ShapeDtypeStruct((Mp, Np), out_dtype),
        grid_spec=pltpu.PrefetchScalarGridSpec(
            num_scalar_prefetch=0,
            grid=grid,
            in_specs=[
                pl.BlockSpec((tm, tk), lambda i, j, k: (i, k)),   # x tile
                w_spec,                                            # W tile (N,K)
                pl.BlockSpec((1, tn), lambda i, j, k: (0, j)),    # bias tile
            ],
            out_specs=pl.BlockSpec((tm, tn), lambda i, j, k: (i, j)),
            scratch_shapes=scratch,
        ),
        compiler_params=pltpu.CompilerParams(
            dimension_semantics=("parallel", "parallel", "arbitrary"),
            vmem_limit_bytes=vmem_limit),
        cost_estimate=cost,
    )(xp, wp, bp)

    out = out_padded if (Mp == M and Np == N) else out_padded[:M, :N]
    return out.reshape(*orig_lead, out_reprs)


# ----------------------------------------------------------------------------
if __name__ == "__main__":
    # small shapes consistent with LinearModel(in_reprs, out_reprs)
    batch = 16
    in_reprs = 64
    out_reprs = 32

    key = jax.random.PRNGKey(0)
    kx, kw, kb = jax.random.split(key, 3)
    x = jax.random.uniform(kx, (batch, in_reprs), jnp.float32, -1.0, 1.0)
    weight = jax.random.uniform(kw, (out_reprs, in_reprs), jnp.float32, -0.1, 0.1)
    bias = jax.random.uniform(kb, (out_reprs,), jnp.float32, -0.1, 0.1)

    y = jax.block_until_ready(linear_forward(x, weight, bias))

    # pure-numpy reference of the PyTorch forward: y = x @ W.T + b
    ref = np.asarray(x) @ np.asarray(weight).T + np.asarray(bias)

    assert y.shape == (batch, out_reprs), y.shape
    assert np.allclose(np.asarray(y), ref, rtol=1e-5, atol=1e-5), \
        f"max abs diff {np.max(np.abs(np.asarray(y) - ref))}"

    print("KERNEL_OK")
</pallas_src>

<mosaic_0001>
module attributes {stable_mosaic.version = 11 : i64} {
  func.func @_linear_kernel_f32(%arg0: i32, %arg1: i32, %arg2: i32, %arg3: memref<8x128xf32, #tpu.memory_space<vmem>>, %arg4: memref<128x128xf32, #tpu.memory_space<vmem>>, %arg5: memref<1x128xf32, #tpu.memory_space<vmem>>, %arg6: memref<8x128xf32, #tpu.memory_space<vmem>>) attributes {dimension_semantics = [#tpu.dimension_semantics<parallel>, #tpu.dimension_semantics<parallel>, #tpu.dimension_semantics<arbitrary>], iteration_bounds = array<i64: 2, 1, 1>, scalar_prefetch = 0 : i64, scratch_operands = 0 : i64, tpu.core_type = #tpu.core_type<tc>, window_params = [{transform_indices = @transform_0, window_bounds = array<i64: 8, 128>}, {transform_indices = @transform_1, window_bounds = array<i64: 128, 128>}, {transform_indices = @transform_2, window_bounds = array<i64: 1, 128>}, {transform_indices = @transform_3, window_bounds = array<i64: 8, 128>}]} {
    %c0_i32 = arith.constant 0 : i32
    %0 = arith.cmpi eq, %arg2, %c0_i32 : i32
    %1 = arith.extui %0 : i1 to i32
    %c0_i32_0 = arith.constant 0 : i32
    %2 = arith.cmpi ne, %1, %c0_i32_0 : i32
    scf.if %2 {
      %c0_8 = arith.constant 0 : index
      %c0_9 = arith.constant 0 : index
      %9 = vector.load %arg5[%c0_8, %c0_9] : memref<1x128xf32, #tpu.memory_space<vmem>>, vector<1x128xf32>
      %10 = vector.shape_cast %9 : vector<1x128xf32> to vector<1x128xf32>
      %11 = vector.broadcast %10 : vector<1x128xf32> to vector<8x128xf32>
      %c0_10 = arith.constant 0 : index
      %c0_11 = arith.constant 0 : index
      %12 = vector.load %arg6[%c0_10, %c0_11] : memref<8x128xf32, #tpu.memory_space<vmem>>, vector<8x128xf32>
      tpu.vector_store %arg6[%c0_10, %c0_11], %11 {strides = array<i32>} : memref<8x128xf32, #tpu.memory_space<vmem>>, vector<8x128xf32>,
    } else {
    }
    %c0 = arith.constant 0 : index
    %c0_1 = arith.constant 0 : index
    %3 = vector.load %arg6[%c0, %c0_1] : memref<8x128xf32, #tpu.memory_space<vmem>>, vector<8x128xf32>
    %c0_2 = arith.constant 0 : index
    %c0_3 = arith.constant 0 : index
    %4 = vector.load %arg3[%c0_2, %c0_3] : memref<8x128xf32, #tpu.memory_space<vmem>>, vector<8x128xf32>
    %c0_4 = arith.constant 0 : index
    %c0_5 = arith.constant 0 : index
    %5 = vector.load %arg4[%c0_4, %c0_5] : memref<128x128xf32, #tpu.memory_space<vmem>>, vector<128x128xf32>
    %cst = arith.constant dense<0.000000e+00> : vector<8x128xf32>
    %6 = tpu.matmul %4, %5, %cst {dimension_numbers = #tpu.dot_dimension_numbers<[1], [1], [0], [0], [0, 0, 1, 0], [], []>} : vector<8x128xf32>, vector<128x128xf32>, vector<8x128xf32> -> vector<8x128xf32>
    %7 = arith.addf %3, %6 : vector<8x128xf32>
    %c0_6 = arith.constant 0 : index
    %c0_7 = arith.constant 0 : index
    %8 = vector.load %arg6[%c0_6, %c0_7] : memref<8x128xf32, #tpu.memory_space<vmem>>, vector<8x128xf32>
    tpu.vector_store %arg6[%c0_6, %c0_7], %7 {strides = array<i32>} : memref<8x128xf32, #tpu.memory_space<vmem>>, vector<8x128xf32>,
    return
  }
  func.func @transform_0(%arg0: i32, %arg1: i32, %arg2: i32) -> (i32, i32) {
    %c0_i32 = arith.constant 0 : i32
    return %arg0, %arg2 : i32, i32
  }
  func.func @transform_1(%arg0: i32, %arg1: i32, %arg2: i32) -> (i32, i32) {
    %c0_i32 = arith.constant 0 : i32
    return %arg1, %arg2 : i32, i32
  }
  func.func @transform_2(%arg0: i32, %arg1: i32, %arg2: i32) -> (i32, i32) {
    %c0_i32 = arith.constant 0 : i32
    %c0_i32_0 = arith.constant 0 : i32
    return %c0_i32, %arg1 : i32, i32
  }
  func.func @transform_3(%arg0: i32, %arg1: i32, %arg2: i32) -> (i32, i32) {
    %c0_i32 = arith.constant 0 : i32
    return %arg0, %arg1 : i32, i32
  }
}

</mosaic_0001>

<bundles_post_ra>
// kernel: tpu_custom_call.1
= control target key start
LH: loop header
LB: loop body
LE: loop exit
PB: predicated region body
PF: predicated region fallthrough
CT: control target
= control target key end

     0   :  { %8 = vsyncpa [#allocation3], 0  ;;  %s1046_s0 = inlined_call_operand.hbm [shape: f32[16,128], index: 0, kind: input, shape index: {}]   ;;  %s1047_s1 = inlined_call_operand.hbm [shape: f32[128,128], index: 1, kind: input, shape index: {}]   ;;  %s1048_s2 = inlined_call_operand.vmem [shape: f32[1,128], index: 2, kind: input, shape index: {}]   ;;  %s1049_s3 = inlined_call_operand.hbm [shape: f32[16,128], index: 3, kind: output, shape index: {}]  }
   0x1   :  { %10 = vsyncpa [#allocation3 + $0x1], 0 }
   0x2   :  { %11 = vsyncpa [#allocation6], 0 }
   0x3   :  { %12 = vsyncpa [#allocation4], 0 }
   0x4   :  { %14 = vsyncpa [#allocation4 + $0x1], 0  ;;  %s822_s12 = smov 0   ;;  %s824_s13 = smov 0  }
   0x5   :  { %s826_s14 = smov 0   ;;  %s828_s15 = smov 0  }
   0x6   :  { %s830_s16 = smov 0   ;;  %s832_s17 = smov 0  }
   0x7 LB: > { %s477_s18 = sadd.s32 4294967295, %s792_s17   ;;  %s478_s19 = sadd.s32 4294967294, %s792_s17   ;;  %s792_s17 = sphi %s832_s17, %s20_s17   ;;  %s788_s16 = sphi %s830_s16, %s1073_s16   ;;  %s784_s15 = sphi %s828_s15, %s1072_s15   ;;  %s780_s14 = sphi %s826_s14, %s1071_s14   ;;  %s776_s13 = sphi %s824_s13, %s1070_s13   ;;  %s772_s12 = sphi %s822_s12, %s1069_s12  }
   0x8   : > { %p61_p0 = scmp.ne.s32.totalorder %s776_s13, %s772_s12  ;;  %p856_p1 = scmp.eq.s32.totalorder %s477_s18, 0 }
   0x9   : > { %p860_p2 = scmp.eq.s32.totalorder %s477_s18, 1  ;;  %p147_p3 = scmp.eq.s32.totalorder %s478_s19, 1 }
   0xa   : > { %s1054_s20 = scalar_select %p856_p1, 1, 0 }
   0xb   : > { %s1055_s21 = scalar_select %p860_p2, 1, 0 }
   0xc   : > { %p866_p4 = por %p856_p1, %p61_p0  ;;  %p479_p5 = scmp.ge.s32.totalorder %s792_s17, 1 }
   0xd   : > { %p871_p6 = por %p147_p3, %p61_p0  ;;  %p154_p7 = scmp.lt.s32.totalorder %s792_s17, 3 }
   0xe   : > { %s1056_s22 = scalar_select %p866_p4, 1, 0 }
   0xf   : > { %s1057_s23 = scalar_select %p871_p6, 1, 0 }
  0x10   : > { %p876_p8 = pnand %p479_p5, %p154_p7  ;;  %s794_s25 = smov [#allocation5]  }
  0x11   : > { %s170_s26 = sshll.u32 %s794_s25, 4  ;;  %s39_s28 = sadd.s32 1, %s788_s16  ;;  %s171_s26 = int_to_ptr.vmem [resolvable:$true] %s170_s26 }
  0x12   : > { %s1058_s24 = scalar_select %p876_p8, 1, 0 }
  0x13   : > { %p578_p9 = pneg %p876_p8  ;;  %s648_s4 = scalar_lea.hbm %s1047_s1, 2048 }
  0x14   : > { %p649_p12 = scmp.ne.s32.totalorder %s1047_s1, %s648_s4  ;;  %p655_p5 = scmp.lt.u32.totalorder %s648_s4, %s1047_s1 }
  0x15   : > { %p885_p11 = pnand %p578_p9, %p856_p1 }
  0x17   : > { %p650_p13 = pneg %p885_p11 }
  0x19   : > { %p651_p0 = pnand %p650_p13, %p649_p12 }
  0x1b   : > { %p652_p3 = pneg %p651_p0 }
  0x1d   : > { %p657_p7 = pnand %p655_p5, %p652_p3 }
  0x1f   : > { %660 = shalt.err (!%p657_p7)
}
  0x20   : > { %s661_s9 = scalar_lea.vmem %s171_s26, 2048  ;;  %p669_p1 = scmp.lt.s32.totalorder %s171_s26, %s171_s26 }
  0x21   : > { %p662_p9 = scmp.ne.s32.totalorder %s171_s26, %s661_s9  ;;  %p670_p4 = scmp.lt.s32.totalorder %s661_s9, %s661_s9 }
  0x23   : > { %p664_p10 = pnand %p662_p9, %p650_p13  ;;  %p671_p8 = por %p670_p4, %p669_p1 }
  0x25   : > { %p665_p6 = pneg %p664_p10 }
  0x27   : > { %p672_p2 = pnand %p671_p8, %p665_p6 }
  0x29   : > { %675 = shalt.err (!%p672_p2)
}
  0x2a   : > { %s795_s10 = smov 128   ;;  %s796_s11 = smov 8  }
  0x2b   : > { %581 = dma.hbm_to_vmem [thread:$0]  (!%p885_p11), %s1047_s1, 2048, %s171_s26, [#allocation6], %s795_s10, %s795_s10, %s796_s11  }
  0x2c   : > { %p41_p1 = scmp.ge.s32.totalorder %s39_s28, 2  ;;  %s48_s25 = sadd.s32 1, %s780_s14 }
  0x2d   : > { %p55_p2 = scmp.ne.s32.totalorder %s780_s14, %s776_s13  ;;  %p56_p4 = scmp.eq.s32.totalorder %s792_s17, 0 }
  0x2e   : > { %s1075_s28 = smov (%p41_p1, %s39_s28), 0  ;;  %p1061_p8 = scmp.ne.s32.totalorder %s1055_s21, 0 }
  0x2f   : > { %p912_p6 = por %p56_p4, %p55_p2  ;;  %s43_s27 = ssub.s32 %s788_s16, %s1075_s28 }
  0x30   : > { %p918_p10 = por %p1061_p8, %p55_p2  ;;  %p591_p12 = scmp.lt.s32.totalorder %s792_s17, 2 }
  0x31   : > { %p46_p11 = scmp.eq.s32.totalorder %s43_s27, 0  ;;  %s190_s26 = sand.u32 1, %s780_s14  }
  0x32   : > { %s483_s4 = sshll.u32 %s190_s26, 3  ;;  %s484_s6 = sshll.u32 %s788_s16, 7 }
  0x33   : > { %s927_s5 = scalar_select %p46_p11, %s780_s14, %s48_s25  }
  0x34   : > { %s933_s9 = scalar_lea.hbm %s1046_s0, %s484_s6  ;;  %s194_s21 = scalar_lea.vmem [#allocation2], %s483_s4 }
  0x35   : > { %s202_s10 = sshll.u32 %s194_s21, 4  ;;  %p939_p13 = pnand %p591_p12, %p912_p6  ;;  %s935_s10 = int_to_ptr.vmem [resolvable:$true] %s202_s10 }
  0x36   : > { %s191_s18 = scalar_lea.sflag [#allocation3], %s190_s26  ;;  %s676_s19 = scalar_lea.hbm %s933_s9, 128 }
  0x37   : > { %p677_p0 = scmp.ne.s32.totalorder %s933_s9, %s676_s19  ;;  %p678_p3 = pneg %p939_p13 }
  0x38   : > { %s681_s4 = scalar_lea.hbm %s1046_s0, 256  ;;  %p682_p9 = scmp.lt.u32.totalorder %s933_s9, %s1046_s0 }
  0x39   : > { %p679_p5 = pnand %p678_p3, %p677_p0  ;;  %p683_p1 = scmp.lt.u32.totalorder %s681_s4, %s676_s19 }
  0x3a   : > { %p685_p4 = scmp.lt.u32.totalorder %s676_s19, %s933_s9 }
  0x3b   : > { %p680_p7 = pneg %p679_p5  ;;  %p684_p2 = por %p683_p1, %p682_p9 }
  0x3d   : > { %p686_p6 = por %p685_p4, %p684_p2 }
  0x3f   : > { %p687_p8 = pnand %p686_p6, %p680_p7 }
  0x41   : > { %690 = shalt.err (!%p687_p8)
}
  0x42   : > { %s691_s26 = scalar_lea.vmem %s935_s10, 128  ;;  %s797_s7 = smov [#allocation2]  }
  0x43   : > { %p692_p12 = scmp.ne.s32.totalorder %s935_s10, %s691_s26  ;;  %s696_s8 = sshll.u32 %s797_s7, 4  ;;  %s697_s8 = int_to_ptr.vmem [resolvable:$false] %s696_s8 }
  0x44   : > { %s698_s21 = scalar_lea.vmem %s697_s8, 256  ;;  %p699_p5 = scmp.lt.s32.totalorder %s935_s10, %s697_s8 }
  0x45   : > { %p694_p11 = pnand %p692_p12, %p678_p3  ;;  %p700_p9 = scmp.lt.s32.totalorder %s698_s21, %s691_s26 }
  0x47   : > { %p695_p0 = pneg %p694_p11  ;;  %p701_p1 = por %p700_p9, %p699_p5 }
  0x49   : > { %p702_p2 = pnand %p701_p1, %p695_p0 }
  0x4b   : > { %705 = shalt.err (!%p702_p2)
}
  0x4c   : > { %585 = dma.hbm_to_vmem [thread:$0]  (!%p939_p13), %s933_s9, 128, %s935_s10, %s191_s18  }
  0x4d   : > { %p1064_p7 = scmp.ne.s32.totalorder %s1058_s24, 0 }
  0x4e   : > { %s971_s19 = sand.u32 (!%p1064_p7), 1, %s776_s13   ;;  %p1065_p3 = scmp.ne.s32.totalorder (!%p1064_p7), %s1056_s22, 0 }
  0x4f   : > { %211 = sbr.rel (%p1064_p7) target bundleno = 385 (0x181), region = 32  ;;  %s486_s25 = sshll.u32 (!%p1064_p7), %s971_s19, 3 }
  0x50   : > { %s214_s27 = scalar_lea.sflag (!%p1064_p7), [#allocation3], %s971_s19  ;;  %s977_s4 = scalar_lea.vmem (!%p1064_p7), [#allocation2], %s486_s25 }
  0x56   : > { %759 = dma.done.wait (%p1065_p3), %s214_s27, 128  }
  0x57   : > { %761 = vsyncadd (%p1065_p3), %s214_s27, 4294967168  ;;  %p1066_p13 = scmp.ne.s32.totalorder %s1054_s20, 0 }
  0x59   : > { %763 = dma.done.wait (%p1066_p13), [#allocation6], 2048  }
  0x5a   : > { %765 = vsyncadd (%p1066_p13), [#allocation6], 4294965248  ;;  %v798_v0 = vmov 0.0|0.0   ;;  %vm799_vm0 = vmmov 0   ;;  %v800_v1 = vmov 0.0   ;;  %v265_v2 = vld [vmem:[#allocation5] sm:$0xff] }
  0x5b   : > { %546 = vmatprep.subr.bf16.mxu0 %v798_v0  ;;  %543 = vmatprep.mubr.msk.f32.mxu0 %vm799_vm0, %v800_v1  ;;  %v266_v3 = vld [vmem:[#allocation5 + $0x8] sm:$0xff]  ;;  %v267_v5 = vld [vmem:[#allocation5 + $0x10] sm:$0xff]  ;;  %v268_v6 = vld [vmem:[#allocation5 + $0x18] sm:$0xff]  ;;  %s491_s24 = sshll.u32 %s784_s15, 7  ;;  %s246_s9 = scalar_lea.vmem [#allocation7], %s486_s25 }
  0x5c   : > { %v547_v4 = vpack.c.bf16 %v266_v3, %v265_v2  ;;  %v550_v7 = vpack.c.bf16 %v268_v6, %v267_v5  ;;  %v269_v8 = vld [vmem:[#allocation5 + $0x20] sm:$0xff]  ;;  %v270_v9 = vld [vmem:[#allocation5 + $0x28] sm:$0xff]  ;;  %v271_v11 = vld [vmem:[#allocation5 + $0x30] sm:$0xff]  ;;  %s368_s10 = sshll.u32 %s246_s9, 4  ;;  %s997_s29 = scalar_lea.hbm %s1049_s3, %s491_s24  ;;  %s999_s10 = int_to_ptr.vmem [resolvable:$true] %s368_s10 }
  0x5d   : > { %v553_v10 = vpack.c.bf16 %v270_v9, %v269_v8  ;;  %v272_v12 = vld [vmem:[#allocation5 + $0x38] sm:$0xff]  ;;  %v273_v14 = vld [vmem:[#allocation5 + $0x40] sm:$0xff]  ;;  %v274_v15 = vld [vmem:[#allocation5 + $0x48] sm:$0xff]  ;;  %s354_s6 = scalar_lea.sflag [#allocation4], %s971_s19  ;;  %s706_s26 = scalar_lea.vmem %s999_s10, 128 }
  0x5e   : > { %548 = vmatpush3.bf16.xpose.msra.mxu0 %v547_v4  ;;  %v556_v13 = vpack.c.bf16 %v272_v12, %v271_v11  ;;  %v559_v16 = vpack.c.bf16 %v274_v15, %v273_v14  ;;  %v275_v17 = vld [vmem:[#allocation5 + $0x50] sm:$0xff]  ;;  %v276_v18 = vld [vmem:[#allocation5 + $0x58] sm:$0xff]  ;;  %v277_v20 = vld [vmem:[#allocation5 + $0x60] sm:$0xff]  ;;  %p707_p4 = scmp.ne.s32.totalorder %s999_s10, %s706_s26  ;;  %s801_s15 = smov [#allocation7]  }
  0x5f   : > { %549 = vmatprep.subr.bf16.mxu0 %v798_v0  ;;  %v562_v19 = vpack.c.bf16 %v276_v18, %v275_v17  ;;  %v278_v21 = vld [vmem:[#allocation5 + $0x68] sm:$0xff]  ;;  %v279_v23 = vld [vmem:[#allocation5 + $0x70] sm:$0xff]  ;;  %v280_v24 = vld [vmem:[#allocation5 + $0x78] sm:$0xff]  ;;  %s710_s7 = sshll.u32 %s801_s15, 4  ;;  %s711_s7 = int_to_ptr.vmem [resolvable:$false] %s710_s7 }
  0x60   : > { %v565_v22 = vpack.c.bf16 %v278_v21, %v277_v20  ;;  %v568_v25 = vpack.c.bf16 %v280_v24, %v279_v23  ;;  %v264_v26 = vld [vmem:[%s977_s4] sm:$0xff]  ;;  %p708_p6 = pnand %p707_p4, %p918_p10  ;;  %s712_s8 = scalar_lea.vmem %s711_s7, 256 }
  0x61   : > { %v489_v27 = vld [vmem:[%s1048_s2] ss:$0 sm:$0xff]  ;;  %p713_p12 = scmp.lt.s32.totalorder %s999_s10, %s711_s7  ;;  %p714_p11 = scmp.lt.s32.totalorder %s712_s8, %s706_s26 }
  0x62   : > { %p709_p8 = pneg %p708_p6 }
  0x63   : > { %p715_p0 = por %p714_p11, %p713_p12 }
  0x65   : > { %p716_p5 = pnand %p715_p0, %p709_p8 }
  0x66   : > { %551 = vmatpush3.bf16.xpose.msra.mxu0 %v550_v7 }
  0x67   : > { %552 = vmatprep.subr.bf16.mxu0 %v798_v0 }
  0x6e   : > { %554 = vmatpush3.bf16.xpose.msra.mxu0 %v553_v10 }
  0x6f   : > { %555 = vmatprep.subr.bf16.mxu0 %v798_v0 }
  0x76   : > { %557 = vmatpush3.bf16.xpose.msra.mxu0 %v556_v13 }
  0x77   : > { %558 = vmatprep.subr.bf16.mxu0 %v798_v0 }
  0x7e   : > { %560 = vmatpush3.bf16.xpose.msra.mxu0 %v559_v16 }
  0x7f   : > { %561 = vmatprep.subr.bf16.mxu0 %v798_v0 }
  0x86   : > { %563 = vmatpush3.bf16.xpose.msra.mxu0 %v562_v19 }
  0x87   : > { %564 = vmatprep.subr.bf16.mxu0 %v798_v0 }
  0x8e   : > { %566 = vmatpush3.bf16.xpose.msra.mxu0 %v565_v22 }
  0x8f   : > { %567 = vmatprep.subr.bf16.mxu0 %v798_v0 }
  0x96   : > { %569 = vmatpush3.bf16.xpose.msra.mxu0 %v568_v25 }
  0x9d   : > { %544 = vmatmul.mubr.f32.vlgmr.msra.gmra.mrb[0].mxu0 %v264_v26 }
 0x170   : > { %v347_v28 = vpop.f32.mrb[0].mxu0 }
 0x171   : > { %v351_v29 = vadd.f32 %v489_v27, %v347_v28  ;;  %v545_v30 = vpop.f32.mrb[1].mxu0 }
 0x173   : > { %352 = vst [vmem:[%s246_s9] sm:$0xff] %v351_v29 }
 0x174   : > { %719 = shalt.err (!%p716_p5)
}
 0x175   : > { %s720_s21 = scalar_lea.hbm %s997_s29, 128  ;;  %s724_s27 = scalar_lea.hbm %s1049_s3, 256 }
 0x176   : > { %p721_p9 = scmp.ne.s32.totalorder %s997_s29, %s720_s21  ;;  %p725_p7 = scmp.lt.u32.totalorder %s997_s29, %s1049_s3 }
 0x177   : > { %p726_p3 = scmp.lt.u32.totalorder %s724_s27, %s720_s21  ;;  %p728_p4 = scmp.lt.u32.totalorder %s720_s21, %s997_s29 }
 0x178   : > { %p722_p1 = pnand %p721_p9, %p918_p10 }
 0x179   : > { %p727_p13 = por %p726_p3, %p725_p7 }
 0x17a   : > { %p723_p2 = pneg %p722_p1 }
 0x17b   : > { %p729_p6 = por %p728_p4, %p727_p13 }
 0x17d   : > { %p730_p8 = pnand %p729_p6, %p723_p2 }
 0x17f   : > { %733 = shalt.err (!%p730_p8)
}
 0x180   : > { %576 = dma.vmem_to_hbm [thread:$0]  (%p918_p10), %s999_s10, 128, %s997_s29, %s354_s6  }
 0x181 PF: > { %s380_s22 = sand.u32 1, %s772_s12   ;;  %p1067_p12 = scmp.ne.s32.totalorder %s1057_s23, 0 }
 0x182   : > { %p1068_p11 = scmp.ge.s32.totalorder %s792_s17, 2  ;;  %s381_s24 = scalar_lea.sflag [#allocation4], %s380_s22 }
 0x184   : > { %p587_p0 = pnand %p1068_p11, %p1067_p12 }
 0x186   : > { %767 = dma.done.wait (!%p587_p0), %s381_s24, 128  }
 0x187   : > { %769 = vsyncadd (!%p587_p0), %s381_s24, 4294967168  ;;  %s20_s17 = sadd.s32 1, %s792_s17   ;;  %s1069_s12 = smov %s776_s13 }
 0x188   : > { %p17_p5 = scmp.ge.s32.totalorder %s20_s17, 4   ;;  %s1070_s13 = smov %s780_s14 }
 0x189   : > { %s1071_s14 = smov %s927_s5  ;;  %s1072_s15 = smov %s788_s16 }
 0x18a   : > { %s1073_s16 = smov %s1075_s28  ;;  %19 = sbr.rel (!%p17_p5) target bundleno = 7 (0x7), region = 89 }
 0x191   :  { %386 = vsyncpa [#allocation3], 1 }
 0x192   :  { %388 = vsyncpa [#allocation3 + $0x1], 1 }
 0x193   :  { %389 = vsyncpa [#allocation6], 1 }
 0x194   :  { %390 = vsyncpa [#allocation4], 1 }
 0x195   :  { %392 = vsyncpa [#allocation4 + $0x1], 1 }

</bundles_post_ra>
